<compile_context>
chip_gen: v6e
topology: v6e:2x2x1
jax: 0.10.0
libtpu: 0.0.40
codegen_flags: <defaults>
</compile_context>

<pallas_src>
import functools

import numpy as np
import jax
import jax.numpy as jnp
from jax import lax
from jax.experimental import pallas as pl
from jax.experimental.pallas import tpu as pltpu


def _pmf_loss_kernel(u_ref, i_ref, n_ref,       # (block_rows, D) f32 slabs (VMEM, pipelined)
                     loss_ref,                   # (8, 128) f32 per-core partial-sum block
                     *, batch_size, block_rows, tiles_per_core):
    c = pl.program_id(0)      # core / batch-shard axis ("parallel")
    g = pl.program_id(1)      # reduction axis over tiles ("arbitrary")

    # Init this core's resident partial-sum block on its first reduction step.
    @pl.when(g == 0)
    def _():
        loss_ref[...] = jnp.zeros_like(loss_ref)

    # One fused multiply + one XLU row-reduce: d = sum(u * (i - n), axis=1).
    u = u_ref[...]
    d = jnp.sum(u * (i_ref[...] - n_ref[...]), axis=1, keepdims=True)       # (Bt, 1)

    # -logsigmoid(d) == softplus(-d), computed stably.
    nls = jnp.maximum(-d, 0.0) + jnp.log1p(jnp.exp(-jnp.abs(d)))            # (Bt, 1)

    # Mask padded rows of the ragged last tile.
    base = (c * tiles_per_core + g) * block_rows
    row = base + lax.broadcasted_iota(jnp.int32, (block_rows, 1), 0)
    nls = jnp.where(row < batch_size, nls, 0.0)

    # Accumulate this tile's scalar sum into the resident per-core block
    # (broadcast over the lane-dense block; wrapper reads element [0, 0]).
    loss_ref[...] += jnp.sum(nls)


def pmf_forward_loss(users_weight, items_weight, batch, neg_items, *,
                     block_rows=512, num_cores=2):
    """JAX wrapper reproducing PMF.forward(batch) -> loss.

    users_weight: (num_users, D) f32 embedding table
    items_weight: (num_items, D) f32 embedding table
    batch:        (B, 3) int32   columns [user_id, rating(unused), item_id]
    neg_items:    (B,)   int32   pre-sampled negative item ids
    """
    users = batch[:, 0].astype(jnp.int32)
    items = batch[:, 2].astype(jnp.int32)
    negs = neg_items.astype(jnp.int32)

    B = int(users.shape[0])
    D = int(users_weight.shape[1])

    # (8, 128) tiling: keep the second-last block dim a multiple of 8.
    block_rows = max(8, (block_rows // 8) * 8)

    # Wrapper-side gathers (one XLA gather each).  At small D the HBM round trip
    # of 3*B*D*4 bytes is far cheaper than 3*B per-row DMA descriptors; the
    # slabs then stream through the kernel via BlockSpec auto-pipelining.
    u_e = jnp.take(users_weight, users, axis=0)
    i_e = jnp.take(items_weight, items, axis=0)
    n_e = jnp.take(items_weight, negs, axis=0)

    tiles_total = pl.cdiv(B, block_rows)
    tiles_per_core = pl.cdiv(tiles_total, num_cores)
    padded_B = num_cores * tiles_per_core * block_rows
    pad = padded_B - B
    if pad:
        zpad = jnp.zeros((pad, D), u_e.dtype)   # padded rows are masked in-kernel
        u_e = jnp.concatenate([u_e, zpad])
        i_e = jnp.concatenate([i_e, zpad])
        n_e = jnp.concatenate([n_e, zpad])

    kernel = functools.partial(_pmf_loss_kernel, batch_size=B,
                               block_rows=block_rows, tiles_per_core=tiles_per_core)

    slab_spec = pl.BlockSpec((block_rows, D),
                             lambda c, g: (c * tiles_per_core + g, 0))

    partials = pl.pallas_call(
        kernel,
        out_shape=jax.ShapeDtypeStruct((num_cores * 8, 128), jnp.float32),
        grid=(num_cores, tiles_per_core),
        in_specs=[slab_spec, slab_spec, slab_spec],
        out_specs=pl.BlockSpec((8, 128), lambda c, g: (c, 0)),
        compiler_params=pltpu.CompilerParams(
            dimension_semantics=("parallel", "arbitrary"),
        ),
    )(u_e, i_e, n_e)

    # Each core's (8,128) block holds its partial sum broadcast over the block.
    core_sums = partials[0::8, 0]                      # (num_cores,)
    return jnp.sum(core_sums) / jnp.float32(B)


def _reference_loss(users_weight, items_weight, batch, neg_items):
    """Pure-JAX reference for the correctness check."""
    u_e = users_weight[batch[:, 0]]
    i_e = items_weight[batch[:, 2]]
    n_e = items_weight[neg_items]
    r_pos = jnp.sum(u_e * i_e, axis=1)
    r_neg = jnp.sum(u_e * n_e, axis=1)
    return jnp.mean(-jax.nn.log_sigmoid(r_pos - r_neg))


if __name__ == "__main__":
    num_users, num_items, embed_dim = 16, 32, 32
    B = 10            # deliberately NOT a multiple of block_rows -> exercises masked ragged tile
    block_rows = 8

    # Deterministic parameter init matching PMF.__init__:
    #   weight = 0.1 * RandomState(1).rand(n, d), float32 (users first, then items).
    rs = np.random.RandomState(1)
    users_weight = jnp.asarray(0.1 * rs.rand(num_users, embed_dim), dtype=jnp.float32)
    items_weight = jnp.asarray(0.1 * rs.rand(num_items, embed_dim), dtype=jnp.float32)

    # Deterministic example batch: columns [user, rating(unused), item].
    key = jax.random.PRNGKey(0)
    k_u, k_i, k_n = jax.random.split(key, 3)
    users = jax.random.randint(k_u, (B,), 0, num_users, dtype=jnp.int32)
    items = jax.random.randint(k_i, (B,), 0, num_items, dtype=jnp.int32)
    ratings = jnp.ones((B,), dtype=jnp.int32)
    batch = jnp.stack([users, ratings, items], axis=1)   # (B, 3)

    # TODO(synk): the PyTorch module rejection-samples neg_items against an external
    # user_dict.json (file I/O + data-dependent while loop); here negatives are
    # deterministically sampled uniformly in [0, num_items).
    neg_items = jax.random.randint(k_n, (B,), 0, num_items, dtype=jnp.int32)

    loss = pmf_forward_loss(users_weight, items_weight, batch, neg_items,
                            block_rows=block_rows, num_cores=2)
    jax.block_until_ready(loss)

    ref = _reference_loss(users_weight, items_weight, batch, neg_items)
    assert jnp.allclose(loss, ref, atol=1e-5, rtol=1e-5), (loss, ref)

    print("KERNEL_OK")
</pallas_src>

<mosaic_0001>
module attributes {stable_mosaic.version = 11 : i64} {
  func.func @_pmf_loss_kernel(%arg0: i32, %arg1: i32, %arg2: memref<8x32xf32, #tpu.memory_space<vmem>>, %arg3: memref<8x32xf32, #tpu.memory_space<vmem>>, %arg4: memref<8x32xf32, #tpu.memory_space<vmem>>, %arg5: memref<8x128xf32, #tpu.memory_space<vmem>>) attributes {dimension_semantics = [#tpu.dimension_semantics<parallel>, #tpu.dimension_semantics<arbitrary>], iteration_bounds = array<i64: 2, 1>, scalar_prefetch = 0 : i64, scratch_operands = 0 : i64, tpu.core_type = #tpu.core_type<tc>, window_params = [{transform_indices = @transform_0, window_bounds = array<i64: 8, 32>}, {transform_indices = @transform_1, window_bounds = array<i64: 8, 32>}, {transform_indices = @transform_2, window_bounds = array<i64: 8, 32>}, {transform_indices = @transform_3, window_bounds = array<i64: 8, 128>}]} {
    %c0_i32 = arith.constant 0 : i32
    %0 = arith.cmpi eq, %arg1, %c0_i32 : i32
    %1 = arith.extui %0 : i1 to i32
    %c0_i32_0 = arith.constant 0 : i32
    %2 = arith.cmpi ne, %1, %c0_i32_0 : i32
    scf.if %2 {
      %cst_15 = arith.constant 0.000000e+00 : f32
      %38 = vector.broadcast %cst_15 : f32 to vector<8x128xf32>
      %c0_16 = arith.constant 0 : index
      %c0_17 = arith.constant 0 : index
      %39 = vector.load %arg5[%c0_16, %c0_17] : memref<8x128xf32, #tpu.memory_space<vmem>>, vector<8x128xf32>
      tpu.vector_store %arg5[%c0_16, %c0_17], %38 {strides = array<i32>} : memref<8x128xf32, #tpu.memory_space<vmem>>, vector<8x128xf32>,
    } else {
    }
    %c0 = arith.constant 0 : index
    %c0_1 = arith.constant 0 : index
    %3 = vector.load %arg2[%c0, %c0_1] : memref<8x32xf32, #tpu.memory_space<vmem>>, vector<8x32xf32>
    %c0_2 = arith.constant 0 : index
    %c0_3 = arith.constant 0 : index
    %4 = vector.load %arg3[%c0_2, %c0_3] : memref<8x32xf32, #tpu.memory_space<vmem>>, vector<8x32xf32>
    %c0_4 = arith.constant 0 : index
    %c0_5 = arith.constant 0 : index
    %5 = vector.load %arg4[%c0_4, %c0_5] : memref<8x32xf32, #tpu.memory_space<vmem>>, vector<8x32xf32>
    %6 = arith.subf %4, %5 : vector<8x32xf32>
    %7 = arith.mulf %3, %6 : vector<8x32xf32>
    %cst = arith.constant dense<0.000000e+00> : vector<8xf32>
    %8 = vector.multi_reduction <add>, %7, %cst [1] : vector<8x32xf32> to vector<8xf32>
    %9 = vector.shape_cast %8 : vector<8xf32> to vector<8x1xf32>
    %cst_6 = arith.constant 0.000000e+00 : f32
    %10 = vector.broadcast %cst_6 : f32 to vector<8x1xf32>
    %11 = arith.subf %10, %9 : vector<8x1xf32>
    %cst_7 = arith.constant 0.000000e+00 : f32
    %12 = vector.broadcast %cst_7 : f32 to vector<8x1xf32>
    %13 = arith.maximumf %11, %12 : vector<8x1xf32>
    %14 = math.absf %9 : vector<8x1xf32>
    %cst_8 = arith.constant 0.000000e+00 : f32
    %15 = vector.broadcast %cst_8 : f32 to vector<8x1xf32>
    %16 = arith.subf %15, %14 : vector<8x1xf32>
    %17 = math.exp %16 : vector<8x1xf32>
    %18 = math.log1p %17 : vector<8x1xf32>
    %19 = arith.addf %13, %18 : vector<8x1xf32>
    %c1_i32 = arith.constant 1 : i32
    %20 = arith.muli %arg0, %c1_i32 : i32
    %21 = arith.addi %20, %arg1 : i32
    %c8_i32 = arith.constant 8 : i32
    %22 = arith.muli %21, %c8_i32 : i32
    %23 = tpu.iota {dimensions = array<i32: 0>} : vector<8x1xi32>
    %24 = vector.broadcast %22 : i32 to vector<8x1xi32>
    %25 = arith.addi %24, %23 : vector<8x1xi32>
    %c10_i32 = arith.constant 10 : i32
    %26 = vector.broadcast %c10_i32 : i32 to vector<8x1xi32>
    %27 = arith.cmpi slt, %25, %26 : vector<8x1xi32>
    %cst_9 = arith.constant 0.000000e+00 : f32
    %28 = vector.broadcast %cst_9 : f32 to vector<8x1xf32>
    %29 = arith.select %27, %19, %28 : vector<8x1xi1>, vector<8x1xf32>
    %c0_10 = arith.constant 0 : index
    %c0_11 = arith.constant 0 : index
    %30 = vector.load %arg5[%c0_10, %c0_11] : memref<8x128xf32, #tpu.memory_space<vmem>>, vector<8x128xf32>
    %31 = vector.shape_cast %29 : vector<8x1xf32> to vector<1x8x1xf32>
    %cst_12 = arith.constant dense<0.000000e+00> : vector<1xf32>
    %32 = vector.multi_reduction <add>, %31, %cst_12 [1, 2] : vector<1x8x1xf32> to vector<1xf32>
    %33 = vector.shape_cast %32 : vector<1xf32> to vector<1x1x1xf32>
    %34 = vector.extract %33[0, 0, 0] : f32 from vector<1x1x1xf32>
    %35 = vector.broadcast %34 : f32 to vector<8x128xf32>
    %36 = arith.addf %30, %35 : vector<8x128xf32>
    %c0_13 = arith.constant 0 : index
    %c0_14 = arith.constant 0 : index
    %37 = vector.load %arg5[%c0_13, %c0_14] : memref<8x128xf32, #tpu.memory_space<vmem>>, vector<8x128xf32>
    tpu.vector_store %arg5[%c0_13, %c0_14], %36 {strides = array<i32>} : memref<8x128xf32, #tpu.memory_space<vmem>>, vector<8x128xf32>,
    return
  }
  func.func @transform_0(%arg0: i32, %arg1: i32) -> (i32, i32) {
    %c1_i32 = arith.constant 1 : i32
    %0 = arith.muli %arg0, %c1_i32 : i32
    %1 = arith.addi %0, %arg1 : i32
    %c0_i32 = arith.constant 0 : i32
    %c0_i32_0 = arith.constant 0 : i32
    return %1, %c0_i32 : i32, i32
  }
  func.func @transform_1(%arg0: i32, %arg1: i32) -> (i32, i32) {
    %c1_i32 = arith.constant 1 : i32
    %0 = arith.muli %arg0, %c1_i32 : i32
    %1 = arith.addi %0, %arg1 : i32
    %c0_i32 = arith.constant 0 : i32
    %c0_i32_0 = arith.constant 0 : i32
    return %1, %c0_i32 : i32, i32
  }
  func.func @transform_2(%arg0: i32, %arg1: i32) -> (i32, i32) {
    %c1_i32 = arith.constant 1 : i32
    %0 = arith.muli %arg0, %c1_i32 : i32
    %1 = arith.addi %0, %arg1 : i32
    %c0_i32 = arith.constant 0 : i32
    %c0_i32_0 = arith.constant 0 : i32
    return %1, %c0_i32 : i32, i32
  }
  func.func @transform_3(%arg0: i32, %arg1: i32) -> (i32, i32) {
    %c0_i32 = arith.constant 0 : i32
    %c0_i32_0 = arith.constant 0 : i32
    return %arg0, %c0_i32 : i32, i32
  }
}

</mosaic_0001>

<bundles_post_ra>
// kernel: tpu_custom_call.1
= control target key start
LH: loop header
LB: loop body
LE: loop exit
PB: predicated region body
PF: predicated region fallthrough
CT: control target
= control target key end

     0   :  { %s964_s0 = inlined_call_operand.hbm [shape: f32[16,32], index: 0, kind: input, shape index: {}]   ;;  %s965_s1 = inlined_call_operand.hbm [shape: f32[16,32], index: 1, kind: input, shape index: {}]   ;;  %s966_s2 = inlined_call_operand.hbm [shape: f32[16,32], index: 2, kind: input, shape index: {}]   ;;  %s967_s3 = inlined_call_operand.hbm [shape: f32[16,128], index: 3, kind: output, shape index: {}]  }
   0x1   :  { %971 = sst [smem:[#allocation14_spill]] %s965_s1 }
   0x2   :  { %8 = vsyncpa [#allocation3], 0 }
   0x3   :  { %10 = vsyncpa [#allocation3 + $0x1], 0 }
   0x4   :  { %11 = vsyncpa [#allocation6], 0 }
   0x5   :  { %13 = vsyncpa [#allocation6 + $0x1], 0 }
   0x6   :  { %14 = vsyncpa [#allocation4], 0 }
   0x7   :  { %16 = vsyncpa [#allocation4 + $0x1], 0  ;;  %s765_s12 = smov 0   ;;  %s767_s13 = smov 0  }
   0x8   :  { %s769_s14 = smov 0   ;;  %s771_s15 = smov 0  }
   0x9   :  { %s773_s16 = smov 0   ;;  %s775_s17 = smov 0  }
   0xa LB: > { %972 = sst [smem:[#allocation12_spill]] %s735_s16  ;;  %s796_s18 = sadd.s32 4294967295, %s739_s17   ;;  %s739_s17 = sphi %s775_s17, %s22_s17   ;;  %s735_s16 = sphi %s773_s16, %s984_s16   ;;  %s731_s15 = sphi %s771_s15, %s983_s15   ;;  %s727_s14 = sphi %s769_s14, %s987_s14   ;;  %s723_s13 = sphi %s767_s13, %s986_s13   ;;  %s719_s12 = sphi %s765_s12, %s985_s12  }
   0xb   : > { %s473_s19 = sadd.s32 4294967294, %s739_s17   ;;  %s34_s20 = sadd.s32 1, %s735_s16 }
   0xc   : > { %s43_s21 = sadd.s32 1, %s727_s14  ;;  %p36_p0 = scmp.ge.s32.totalorder %s34_s20, 2 }
   0xd   : > { %p50_p1 = scmp.ne.s32.totalorder %s727_s14, %s723_s13  ;;  %p51_p2 = scmp.eq.s32.totalorder %s739_s17, 0 }
   0xe   : > { %p56_p3 = scmp.ne.s32.totalorder %s723_s13, %s719_s12  ;;  %s989_s20 = smov (%p36_p0, %s34_s20), 0 }
   0xf   : > { %973 = sst [smem:[#allocation13_spill]] %s989_s20  ;;  %p808_p4 = por %p51_p2, %p50_p1 }
  0x10   : > { %p57_p5 = scmp.eq.s32.totalorder %s796_s18, 0  ;;  %s40_s23 = ssub.s32 %s735_s16, %s989_s20 }
  0x11   : > { %p136_p6 = scmp.eq.s32.totalorder %s796_s18, 1  ;;  %p41_p7 = scmp.eq.s32.totalorder %s40_s23, 0 }
  0x12   : > { %p816_p8 = por %p57_p5, %p56_p3  ;;  %p142_p10 = scmp.eq.s32.totalorder %s473_s19, 1 }
  0x13   : > { %p820_p9 = por %p136_p6, %p50_p1  ;;  %p516_p13 = scmp.lt.s32.totalorder %s739_s17, 2 }
  0x14   : > { %s825_s26 = scalar_select %p41_p7, %s727_s14, %s43_s21  }
  0x15   : > { %p827_p11 = por %p142_p10, %p56_p3  ;;  %s968_s28 = sand.u32 1, %s727_s14  }
  0x16   : > { %s836_s29 = sshll.u32 %s968_s28, 3  ;;  %s839_s30 = sshll.u32 %s735_s16, 7 }
  0x17   : > { %p843_p0 = pnand %p516_p13, %p808_p4  ;;  %s181_s5 = sand.u32 1, %s739_s17  }
  0x18   : > { %s979_s1 = sld [smem:[#allocation14_spill]]  ;;  %s185_s9 = scalar_lea.vmem [#allocation5], %s836_s29 }
  0x19   : > { %s193_s10 = sshll.u32 %s185_s9, 4  ;;  %p482_p1 = scmp.ge.s32.totalorder %s739_s17, 1  ;;  %s194_s10 = int_to_ptr.vmem [resolvable:$true] %s193_s10 }
  0x1a   : > { %p217_p2 = scmp.lt.s32.totalorder %s739_s17, 3  ;;  %s855_s11 = scalar_lea.sflag [#allocation6], %s181_s5 }
  0x1b   : > { %p573_p3 = pneg %p843_p0  ;;  %s584_s19 = scalar_lea.vmem %s194_s10, 128 }
  0x1c   : > { %p585_p4 = scmp.ne.s32.totalorder %s194_s10, %s584_s19  ;;  %s741_s21 = smov [#allocation5]  }
  0x1d   : > { %s589_s22 = sshll.u32 %s741_s21, 4  ;;  %s590_s22 = int_to_ptr.vmem [resolvable:$false] %s589_s22 }
  0x1e   : > { %s191_s8 = scalar_lea.hbm %s979_s1, %s839_s30  ;;  %p587_p5 = pnand %p585_p4, %p573_p3 }
  0x1f   : > { %s591_s23 = scalar_lea.vmem %s590_s22, 256  ;;  %p592_p7 = scmp.lt.s32.totalorder %s194_s10, %s590_s22 }
  0x20   : > { %p588_p6 = pneg %p587_p5  ;;  %p593_p10 = scmp.lt.s32.totalorder %s591_s23, %s584_s19 }
  0x22   : > { %p594_p13 = por %p593_p10, %p592_p7 }
  0x24   : > { %p595_p12 = pnand %p594_p13, %p588_p6 }
  0x26   : > { %598 = shalt.err (!%p595_p12)
}
  0x27   : > { %508 = dma.hbm_to_vmem [thread:$0]  (!%p843_p0), %s191_s8, 128, %s194_s10, %s855_s11  }
  0x28   : > { %p869_p4 = pnand %p482_p1, %p217_p2  ;;  %s172_s9 = scalar_lea.hbm %s964_s0, %s839_s30 }
  0x29   : > { %s166_s19 = scalar_lea.vmem [#allocation2], %s836_s29  ;;  %s210_s28 = scalar_lea.hbm %s966_s2, %s839_s30 }
  0x2a   : > { %s174_s21 = sshll.u32 %s166_s19, 4  ;;  %s981_s1 = sand.u32 1, %s727_s14   ;;  %s175_s21 = int_to_ptr.vmem [resolvable:$true] %s174_s21 }
  0x2b   : > { %s163_s20 = scalar_lea.sflag [#allocation3], %s981_s1  ;;  %s612_s8 = scalar_lea.vmem %s175_s21, 128 }
  0x2c   : > { %p613_p12 = scmp.ne.s32.totalorder %s175_s21, %s612_s8  ;;  %s742_s10 = smov [#allocation2]  }
  0x2d   : > { %s617_s16 = sshll.u32 %s742_s10, 4  ;;  %s618_s16 = int_to_ptr.vmem [resolvable:$false] %s617_s16 }
  0x2e   : > { %p615_p1 = pnand %p613_p12, %p573_p3  ;;  %s619_s6 = scalar_lea.vmem %s618_s16, 256 }
  0x2f   : > { %p620_p5 = scmp.lt.s32.totalorder %s175_s21, %s618_s16  ;;  %p621_p6 = scmp.lt.s32.totalorder %s619_s6, %s612_s8 }
  0x30   : > { %p616_p2 = pneg %p615_p1 }
  0x31   : > { %p622_p7 = por %p621_p6, %p620_p5 }
  0x33   : > { %p623_p10 = pnand %p622_p7, %p616_p2 }
  0x35   : > { %626 = shalt.err (!%p623_p10)
}
  0x36   : > { %505 = dma.hbm_to_vmem [thread:$0]  (!%p843_p0), %s172_s9, 128, %s175_s21, %s163_s20  }
  0x37   : > { %s204_s1 = scalar_lea.vmem [#allocation7], %s836_s29  ;;  %s743_s22 = smov [#allocation7]  }
  0x38   : > { %s212_s7 = sshll.u32 %s204_s1, 4  ;;  %s645_s16 = sshll.u32 %s743_s22, 4  ;;  %s213_s7 = int_to_ptr.vmem [resolvable:$true] %s212_s7  ;;  %s646_s16 = int_to_ptr.vmem [resolvable:$false] %s645_s16 }
  0x39   : > { %s640_s19 = scalar_lea.vmem %s213_s7, 128  ;;  %s647_s23 = scalar_lea.vmem %s646_s16, 256 }
  0x3a   : > { %p641_p13 = scmp.ne.s32.totalorder %s213_s7, %s640_s19  ;;  %p648_p2 = scmp.lt.s32.totalorder %s213_s7, %s646_s16 }
  0x3b   : > { %p649_p5 = scmp.lt.s32.totalorder %s647_s23, %s640_s19 }
  0x3c   : > { %p643_p12 = pnand %p641_p13, %p573_p3 }
  0x3d   : > { %p650_p6 = por %p649_p5, %p648_p2 }
  0x3e   : > { %p644_p1 = pneg %p643_p12 }
  0x40   : > { %p651_p7 = pnand %p650_p6, %p644_p1 }
  0x42   : > { %654 = shalt.err (!%p651_p7)
}
  0x43   : > { %511 = dma.hbm_to_vmem [thread:$0]  (!%p843_p0), %s210_s28, 128, %s213_s7, %s855_s11  }
  0x44   : > { %221 = sbr.rel (%p869_p4) target bundleno = 479 (0x1df), region = 32  ;;  %s904_s9 = sand.u32 (!%p869_p4), 1, %s723_s13  }
  0x45   : > { %s907_s21 = sshll.u32 (!%p869_p4), %s904_s9, 3  ;;  %s224_s4 = scalar_lea.sflag (!%p869_p4), [#allocation3], %s904_s9 }
  0x46   : > { %s227_s8 = scalar_lea.vmem (!%p869_p4), [#allocation2], %s907_s21 }
  0x49   : > { %706 = dma.done.wait (%p816_p8), %s224_s4, 128  }
  0x4a   : > { %708 = vsyncadd (%p816_p8), %s224_s4, 4294967168  ;;  %s232_s28 = sand.u32 1, %s796_s18   ;;  %s236_s11 = scalar_lea.vmem [#allocation5], %s907_s21 }
  0x4b   : > { %s233_s30 = scalar_lea.sflag [#allocation6], %s232_s28 }
  0x4c   : > { %710 = dma.done.wait (%p816_p8), %s233_s30, 256  }
  0x4d   : > { %712 = vsyncadd (%p816_p8), %s233_s30, 4294967040  ;;  %v286_v0 = vld [vmem:[%s227_s8] sm:$0xff]  ;;  %v287_v1 = vld [vmem:[%s236_s11] sm:$0xff]  ;;  %s245_s5 = scalar_lea.vmem [#allocation7], %s907_s21  ;;  %vm291_vm0 = vcmask 261120   ;;  %v313_v12 = vlaneseq  ;;  %s487_s18 = sshll.u32 %s731_s15, 3 }
  0x4e   : > { %v288_v2 = vld [vmem:[%s245_s5] sm:$0xff]  ;;  %v315_v15 = vstv %s487_s18  ;;  %vm320_vm3 = vcmask 7168   ;;  %s489_s24 = sshll.u32 %s731_s15, 7  ;;  %s277_s10 = scalar_lea.vmem [#allocation8], %s907_s21 }
  0x4f   : > { %v289_v3 = vsub.f32 %v287_v1, %v288_v2  ;;  %v314_v14 = vshrl.u32 %v313_v12, 7  ;;  %s348_s6 = sshll.u32 %s277_s10, 4  ;;  %s346_s22 = scalar_lea.hbm %s967_s3, %s489_s24  ;;  %s349_s6 = int_to_ptr.vmem [resolvable:$true] %s348_s6 }
  0x50   : > { %s335_s16 = scalar_lea.sflag [#allocation4], %s904_s9  ;;  %s655_s23 = scalar_lea.vmem %s349_s6, 128 }
  0x51   : > { %v290_v4 = vmul.f32 %v289_v3, %v286_v0  ;;  %v316_v19 = vadd.s32 %v315_v15, %v314_v14  ;;  %p656_p8 = scmp.ne.s32.totalorder %s349_s6, %s655_s23  ;;  %s744_s20 = smov [#allocation8]  }
  0x52   : > { %s659_s29 = sshll.u32 %s744_s20, 4  ;;  %s660_s29 = int_to_ptr.vmem [resolvable:$false] %s659_s29 }
  0x53   : > { %v292_v5 = vsel %vm291_vm0, %v290_v4, 0.0  ;;  %vm317_vm2 = vcmp.lt.s32.totalorder %v316_v19, 10  ;;  %p657_p0 = pnand %p656_p8, %p820_p9  ;;  %s661_s15 = scalar_lea.vmem %s660_s29, 256 }
  0x54   : > { %293 = vadd.xlane.f32.xlu0 %v292_v5  ;;  %p662_p4 = scmp.lt.s32.totalorder %s349_s6, %s660_s29  ;;  %p663_p10 = scmp.lt.s32.totalorder %s661_s15, %s655_s23 }
  0x55   : > { %p658_p3 = pneg %p657_p0 }
  0x56   : > { %p664_p13 = por %p663_p10, %p662_p4 }
  0x58   : > { %p665_p12 = pnand %p664_p13, %p658_p3 }
  0xdd   : > { %v294_v6 = vpop.xlane.xlu0 %293 }
  0xde   : > { %v297_v7 = vand.u32 2147483647, %v294_v6  ;;  %v295_v17 = vsub.f32 0.0, %v294_v6 }
  0xe0   : > { %v298_v8 = vsub.f32 0.0, %v297_v7  ;;  %v296_v23 = vmax.f32 %v295_v17, 0.0 }
  0xe2   : > { %v299_v9 = vmul.f32 1.442695, %v298_v8 }
  0xe4   : > { %567 = vpow2.f32 %v299_v9 }
  0xf1   : > { %v568_v10 = vpop.eup %567 }
  0xf2   : > { %v301_v11 = vadd.f32 1.0, %v568_v10  ;;  %v304_v13 = vmul.f32 -0.5, %v568_v10  ;;  %v307_v18 = vand.u32 2147483647, %v568_v10 }
  0xf4   : > { %569 = vlog2.f32 %v301_v11  ;;  %v305_v16 = vadd.f32 1.0, %v304_v13  ;;  %vm308_vm1 = vcmp.lt.f32.partialorder %v307_v18, 0.0004427343 }
  0xf6   : > { %v306_v22 = vmul.f32 %v568_v10, %v305_v16 }
 0x101   : > { %v570_v20 = vpop.eup %569 }
 0x102   : > { %v303_v21 = vmul.f32 0.6931472, %v570_v20 }
 0x104   : > { %v309_v24 = vsel %vm308_vm1, %v306_v22, %v303_v21 }
 0x105   : > { %v310_v25 = vadd.f32 %v309_v24, %v296_v23 }
 0x107   : > { %v318_v26 = vsel %vm317_vm2, %v310_v25, 0.0 }
 0x108   : > { %v321_v27 = vsel %vm320_vm3, %v318_v26, 0.0 }
 0x109   : > { %322 = vadd.xlane.f32.xlu0 %v321_v27 }
 0x192   : > { %v323_v28 = vpop.xlane.xlu0 %322 }
 0x193   : > { %v324_v29 = vrot.slane %v323_v28, 4 }
 0x195   : > { %v325_v30 = vadd.f32 %v324_v29, %v323_v28 }
 0x197   : > { %v326_v31 = vrot.slane %v325_v30, 2 }
 0x199   : > { %v327_v32 = vadd.f32 %v326_v31, %v325_v30 }
 0x19b   : > { %v328_v33 = vrot.slane %v327_v32, 1 }
 0x19d   : > { %v329_v34 = vadd.f32 %v328_v33, %v327_v32 }
 0x19f   : > { %492 = vpush %v329_v34 }
 0x1d0   : > { %s493_s1 = spop %492 }
 0x1d1   : > { %v331_v35 = vstv %s493_s1 }
 0x1d2   : > { %333 = vst [vmem:[%s277_s10] sm:$0xff] %v331_v35 }
 0x1d3   : > { %668 = shalt.err (!%p665_p12)
}
 0x1d4   : > { %s669_s21 = scalar_lea.hbm %s346_s22, 128  ;;  %s673_s8 = scalar_lea.hbm %s967_s3, 256 }
 0x1d5   : > { %p670_p1 = scmp.ne.s32.totalorder %s346_s22, %s669_s21  ;;  %p674_p6 = scmp.lt.s32.totalorder %s346_s22, %s967_s3 }
 0x1d6   : > { %p675_p7 = scmp.lt.s32.totalorder %s673_s8, %s669_s21 }
 0x1d7   : > { %p671_p2 = pnand %p670_p1, %p820_p9 }
 0x1d8   : > { %p676_p8 = por %p675_p7, %p674_p6 }
 0x1d9   : > { %p672_p5 = pneg %p671_p2 }
 0x1db   : > { %p677_p0 = pnand %p676_p8, %p672_p5 }
 0x1dd   : > { %680 = shalt.err (!%p677_p0)
}
 0x1de   : > { %500 = dma.vmem_to_hbm [thread:$0]  (%p820_p9), %s349_s6, 128, %s346_s22, %s335_s16  }
 0x1df PF: > { %s360_s11 = sand.u32 1, %s719_s12   ;;  %p982_p3 = scmp.ge.s32.totalorder %s739_s17, 2 }
 0x1e0   : > { %s361_s5 = scalar_lea.sflag [#allocation4], %s360_s11 }
 0x1e1   : > { %p513_p4 = pnand %p982_p3, %p827_p11 }
 0x1e3   : > { %p514_p10 = pneg %p513_p4 }
 0x1e5   : > { %714 = dma.done.wait (%p514_p10), %s361_s5, 128  }
 0x1e6   : > { %716 = vsyncadd (%p514_p10), %s361_s5, 4294967168  ;;  %s22_s17 = sadd.s32 1, %s739_s17   ;;  %s983_s15 = sld [smem:[#allocation12_spill]] }
 0x1e7   : > { %p19_p13 = scmp.ge.s32.totalorder %s22_s17, 4   ;;  %s984_s16 = sld [smem:[#allocation13_spill]] }
 0x1e8   : > { %s985_s12 = smov %s723_s13  ;;  %s986_s13 = smov %s727_s14 }
 0x1e9   : > { %s987_s14 = smov %s825_s26  ;;  %21 = sbr.rel (!%p19_p13) target bundleno = 10 (0xa), region = 105 }
 0x1ee   :  { %366 = vsyncpa [#allocation3], 1 }
 0x1ef   :  { %368 = vsyncpa [#allocation3 + $0x1], 1 }
 0x1f0   :  { %369 = vsyncpa [#allocation6], 1 }
 0x1f1   :  { %371 = vsyncpa [#allocation6 + $0x1], 1 }
 0x1f2   :  { %372 = vsyncpa [#allocation4], 1 }
 0x1f3   :  { %374 = vsyncpa [#allocation4 + $0x1], 1 }

</bundles_post_ra>
